<compile_context>
chip_gen: v5e
topology: v5e:2x2
jax: 0.10.0
libtpu: 0.0.40
codegen_flags: <defaults>
</compile_context>

<pallas_src>
import math
import functools

import numpy as np
import jax
import jax.numpy as jnp
from jax import lax
from jax.experimental import pallas as pl
from jax.experimental.pallas import tpu as pltpu


# contract last dims of both operands: a @ b.T without materializing a transpose
_NT_DIMS = (((1,), (1,)), ((), ()))


def _round_up(n, m):
    return ((n + m - 1) // m) * m


def _vmem_capacity_bytes():
    # v5e / v6e: 128 MiB, v7x: 64 MiB per TensorCore.  Fall back to the conservative
    # (smallest) value if the query is unavailable.
    try:
        return int(pltpu.get_tpu_info().vmem_capacity_bytes)
    except Exception:
        return 64 * 1024 * 1024


def _pick_tile(n, fits):
    """Largest power-of-two tile dividing n whose per-step VMEM estimate fits the budget."""
    candidates = [t for t in (1024, 512, 256, 128, 64, 32, 16, 8) if n % t == 0]
    for t in candidates:
        if fits(t):
            return t
    return candidates[-1] if candidates else n


# ---------------------------------------------------------------------------
# QKV projection kernels (bf16 MXU matmuls, f32 accumulation, bf16 stores).
# ---------------------------------------------------------------------------
def _qkv_proj_wide_kernel(x_ref, w_ref, o_ref):
    # Lane-dense variant: one full-width (Tn, C) x (C, C) matmul per (b, n-tile, q/k/v)
    # step, written straight into the (3, B, N, C) layout (unmasked full-lane stores).
    # TODO(synk): for very large C add K-dim tiling with an f32 VMEM accumulator so the
    # x block does not have to hold the full C width.
    o_ref[0, 0] = lax.dot_general(
        x_ref[0], w_ref[0], _NT_DIMS, preferred_element_type=jnp.float32
    ).astype(o_ref.dtype)


def _qkv_proj_head_kernel(x_ref, w_ref, o_ref):
    # Per-head fallback (head_dim not a multiple of 128): (Tn, C) x (C, D) matmul written
    # into the (3, B, H, N, D) layout.
    # TODO(synk): D-wide stores are lane-sparse for D < 128 and under-fill the 256-wide
    # MXU; the lane-dense path above is used automatically when D % 128 == 0.
    o_ref[0, 0, 0] = lax.dot_general(
        x_ref[0], w_ref[0, 0], _NT_DIMS, preferred_element_type=jnp.float32
    ).astype(o_ref.dtype)


# ---------------------------------------------------------------------------
# Attention math shared by both layouts.
# ---------------------------------------------------------------------------
def _attn_math(q, k, v, *, scaler, n_valid, w_dtype):
    # q: (Tq, D) bf16;  k, v: (Npad, D) bf16
    scores = lax.dot_general(q, k, _NT_DIMS, preferred_element_type=jnp.float32)
    scores = scores * scaler
    n_pad = k.shape[0]
    if n_valid < n_pad:  # compile-time branch: only emitted when N was padded
        key_idx = lax.broadcasted_iota(jnp.int32, scores.shape, 1)
        scores = jnp.where(key_idx < n_valid, scores, -1e30)
    scores = scores - jnp.max(scores, axis=-1, keepdims=True)
    e = jnp.exp(scores)
    # Exact reciprocal: it only runs over Tq elements (not Tq*N) and keeps the returned
    # att_weights rows summing to 1 at f32 precision (perf review correctness note).
    w = e * pl.reciprocal(jnp.sum(e, axis=-1, keepdims=True))
    # dropout_rate = 0.0 -> identity (matches the reference default).
    att = jnp.dot(w.astype(jnp.bfloat16), v, preferred_element_type=jnp.float32)
    return att, w.astype(w_dtype)


def _attention_dense_kernel(q_ref, k_ref, v_ref, o_ref, w_ref, *, scaler, n_valid):
    att, w = _attn_math(q_ref[0, 0], k_ref[0, 0], v_ref[0, 0],
                        scaler=scaler, n_valid=n_valid, w_dtype=w_ref.dtype)
    o_ref[0] = att.astype(o_ref.dtype)      # lane-dense write into (B, N, C)
    w_ref[0, 0] = w


def _attention_head_kernel(q_ref, k_ref, v_ref, o_ref, w_ref, *, scaler, n_valid):
    att, w = _attn_math(q_ref[0, 0, 0], k_ref[0, 0, 0], v_ref[0, 0, 0],
                        scaler=scaler, n_valid=n_valid, w_dtype=w_ref.dtype)
    o_ref[0, 0] = att.astype(o_ref.dtype)
    w_ref[0, 0] = w


# ---------------------------------------------------------------------------
# Wrapper: MultiHeadStandardAttention.forward (self-attention path)
# ---------------------------------------------------------------------------
def multihead_standard_attention(x, w_qkv, num_heads, batch_mask=None,
                                 weights_dtype=jnp.float32):
    """x: (B, N, C) float32; w_qkv: (3C, C) float32 (nn.Linear weight layout).

    Returns (att (B, N, C) float32, att_weights (B, H, N, N) `weights_dtype`).
    Set weights_dtype=jnp.bfloat16 to halve the dominant B*H*N^2 HBM writeback at
    large N (within tolerance of the f32 softmax).
    """
    B, N, C = x.shape
    H = num_heads
    assert C % H == 0, "hidden_dim must be divisible by num_heads"
    D = C // H
    scaler = 1.0 / math.sqrt(D)

    # The reference self-attention path builds query_padding_mask from batch_mask but
    # never applies it to the scores -> no effect on the output.
    del batch_mask

    w_bytes = np.dtype(weights_dtype).itemsize

    vmem_cap = _vmem_capacity_bytes()
    vmem_limit = int(0.75 * vmem_cap)   # ~48 MiB on v7x, ~96 MiB on v5e/v6e
    budget = int(0.8 * vmem_limit)      # headroom for compiler scratch / misc

    # Pad N so blocks satisfy the (8, 128) tiling constraint and tiles pipeline even for
    # awkward N; padded keys are masked in-kernel and padded rows sliced off at the end.
    n_pad = _round_up(N, 128 if N >= 128 else 8)
    x_bf = x.astype(jnp.bfloat16)
    if n_pad != N:
        x_bf = jnp.pad(x_bf, ((0, 0), (0, n_pad - N), (0, 0)))

    lane_dense = (D % 128 == 0)

    if lane_dense:
        # ---------------- QKV projection -> (3, B, Npad, C) bf16 (lane-dense) --------
        w3 = w_qkv.reshape(3, C, C).astype(jnp.bfloat16)
        tn = _pick_tile(
            n_pad, lambda t: (2 * t * C * 2 + 2 * C * C * 2 + 2 * t * C * 2) <= budget)
        qkv = pl.pallas_call(
            _qkv_proj_wide_kernel,
            out_shape=jax.ShapeDtypeStruct((3, B, n_pad, C), jnp.bfloat16),
            grid=(B, n_pad // tn, 3),
            in_specs=[
                pl.BlockSpec((1, tn, C), lambda b, nt, j: (b, nt, 0)),
                pl.BlockSpec((1, C, C), lambda b, nt, j: (j, 0, 0)),
            ],
            out_specs=pl.BlockSpec((1, 1, tn, C), lambda b, nt, j: (j, b, nt, 0)),
            compiler_params=pltpu.CompilerParams(
                dimension_semantics=("parallel", "parallel", "arbitrary"),
                vmem_limit_bytes=vmem_limit,
            ),
        )(x_bf, w3)

        # ---------------- Attention: grid (B, H, q-tiles), output in (B, N, C) -------
        tq = _pick_tile(
            n_pad,
            lambda t: (4 * n_pad * D * 2          # K, V double-buffered (bf16)
                       + 2 * t * D * 2            # q double-buffered (bf16)
                       + 2 * t * n_pad * w_bytes  # att_weights out, double-buffered
                       + 2 * t * D * 4            # att out, double-buffered (f32)
                       + 3 * t * n_pad * 4        # scores / e / w f32 intermediates
                       ) <= budget,
        )
        # TODO(synk): on v7x, K/V could additionally use pipeline_mode=pl.Buffered(1)
        # (their block index is constant over the inner qi axis) to halve K/V VMEM.
        att_pad, att_weights = pl.pallas_call(
            functools.partial(_attention_dense_kernel, scaler=scaler, n_valid=N),
            out_shape=(
                jax.ShapeDtypeStruct((B, n_pad, C), jnp.float32),
                jax.ShapeDtypeStruct((B, H, n_pad, n_pad), weights_dtype),
            ),
            grid=(B, H, n_pad // tq),
            in_specs=[
                pl.BlockSpec((1, 1, tq, D), lambda b, h, qi: (0, b, qi, h)),
                pl.BlockSpec((1, 1, n_pad, D), lambda b, h, qi: (1, b, 0, h)),
                pl.BlockSpec((1, 1, n_pad, D), lambda b, h, qi: (2, b, 0, h)),
            ],
            out_specs=(
                pl.BlockSpec((1, tq, D), lambda b, h, qi: (b, qi, h)),
                pl.BlockSpec((1, 1, tq, n_pad), lambda b, h, qi: (b, h, qi, 0)),
            ),
            compiler_params=pltpu.CompilerParams(
                # qi is 'arbitrary' so megacore sharding happens on (B, H) and each
                # core keeps its own K/V block resident (no duplicated K/V traffic).
                dimension_semantics=("parallel", "parallel", "arbitrary"),
                vmem_limit_bytes=vmem_limit,
            ),
        )(qkv, qkv, qkv)
        att = att_pad[:, :N, :]
    else:
        # ---------------- Fallback for head_dim not a multiple of 128 ----------------
        w3 = w_qkv.reshape(3, H, D, C).astype(jnp.bfloat16)
        tn = _pick_tile(
            n_pad, lambda t: (2 * t * C * 2 + 2 * D * C * 2 + 2 * t * D * 2) <= budget)
        qkv = pl.pallas_call(
            _qkv_proj_head_kernel,
            out_shape=jax.ShapeDtypeStruct((3, B, H, n_pad, D), jnp.bfloat16),
            grid=(B, n_pad // tn, 3, H),
            in_specs=[
                pl.BlockSpec((1, tn, C), lambda b, nt, j, h: (b, nt, 0)),
                pl.BlockSpec((1, 1, D, C), lambda b, nt, j, h: (j, h, 0, 0)),
            ],
            out_specs=pl.BlockSpec((1, 1, 1, tn, D),
                                   lambda b, nt, j, h: (j, b, h, nt, 0)),
            compiler_params=pltpu.CompilerParams(
                dimension_semantics=("parallel", "parallel", "arbitrary", "arbitrary"),
                vmem_limit_bytes=vmem_limit,
            ),
        )(x_bf, w3)

        tq = _pick_tile(
            n_pad,
            lambda t: (4 * n_pad * D * 2 + 2 * t * D * 2 + 2 * t * n_pad * w_bytes
                       + 2 * t * D * 4 + 3 * t * n_pad * 4) <= budget,
        )
        att_bhnd, att_weights = pl.pallas_call(
            functools.partial(_attention_head_kernel, scaler=scaler, n_valid=N),
            out_shape=(
                jax.ShapeDtypeStruct((B, H, n_pad, D), jnp.float32),
                jax.ShapeDtypeStruct((B, H, n_pad, n_pad), weights_dtype),
            ),
            grid=(B, H, n_pad // tq),
            in_specs=[
                pl.BlockSpec((1, 1, 1, tq, D), lambda b, h, qi: (0, b, h, qi, 0)),
                pl.BlockSpec((1, 1, 1, n_pad, D), lambda b, h, qi: (1, b, h, 0, 0)),
                pl.BlockSpec((1, 1, 1, n_pad, D), lambda b, h, qi: (2, b, h, 0, 0)),
            ],
            out_specs=(
                pl.BlockSpec((1, 1, tq, D), lambda b, h, qi: (b, h, qi, 0)),
                pl.BlockSpec((1, 1, tq, n_pad), lambda b, h, qi: (b, h, qi, 0)),
            ),
            compiler_params=pltpu.CompilerParams(
                dimension_semantics=("parallel", "parallel", "arbitrary"),
                vmem_limit_bytes=vmem_limit,
            ),
        )(qkv, qkv, qkv)
        # TODO(synk): for head_dim < 128 a lane-dense (B, N, C) out layout cannot be
        # expressed with a conforming BlockSpec, so this one transpose stays in XLA.
        att = jnp.transpose(att_bhnd[:, :, :N, :], (0, 2, 1, 3)).reshape(B, N, C)

    att_weights = att_weights[:, :, :N, :N]
    return att, att_weights


# ---------------------------------------------------------------------------
# Pure-JAX reference (mirrors the PyTorch math, f32) for a sanity check.
# ---------------------------------------------------------------------------
def reference(x, w_qkv, num_heads):
    B, N, C = x.shape
    H, D = num_heads, C // num_heads
    qkv = (x.reshape(B * N, C) @ w_qkv.T).reshape(B, N, 3, H, D)
    qkv = jnp.transpose(qkv, (2, 0, 3, 1, 4))
    q, k, v = qkv[0], qkv[1], qkv[2]
    scores = jnp.einsum("bhid,bhjd->bhij", q, k) * (1.0 / math.sqrt(D))
    scores = scores - jnp.max(scores, axis=-1, keepdims=True)
    w = jax.nn.softmax(scores, axis=-1)
    att = jnp.einsum("bhij,bhjd->bhid", w, v)
    att = jnp.transpose(att, (0, 2, 1, 3)).reshape(B, N, C)
    return att, w


def _run_case(key, B, N, C, H):
    k_x, k_w = jax.random.split(key)
    x = jax.random.normal(k_x, (B, N, C), dtype=jnp.float32)
    # nn.Linear(hidden, 3*hidden, bias=False) default init: U(-1/sqrt(in), 1/sqrt(in))
    bound = 1.0 / math.sqrt(C)
    w_qkv = jax.random.uniform(k_w, (3 * C, C), minval=-bound, maxval=bound,
                               dtype=jnp.float32)
    # Present in the reference call signature but unused in the self-attention path.
    batch_mask = {"attention_mask": jnp.zeros((B, N), dtype=jnp.float32)}

    att, att_w = multihead_standard_attention(x, w_qkv, H, batch_mask=batch_mask)
    att = jax.block_until_ready(att)
    att_w = jax.block_until_ready(att_w)

    ref_att, ref_w = reference(x, w_qkv, H)
    assert att.shape == (B, N, C)
    assert att_w.shape == (B, H, N, N)
    # Tolerance set for bf16 MXU matmuls (f32 accumulation).
    assert jnp.allclose(att, ref_att, atol=2e-2, rtol=2e-2), (
        f"att mismatch, max abs err {jnp.max(jnp.abs(att - ref_att))}")
    assert jnp.allclose(att_w, ref_w, atol=2e-2, rtol=2e-2), (
        f"att_weights mismatch, max abs err {jnp.max(jnp.abs(att_w - ref_w))}")


if __name__ == "__main__":
    key = jax.random.PRNGKey(0)
    k1, k2, k3 = jax.random.split(key, 3)
    # 1) head_dim < 128 fallback path (module-like tiny default shapes).
    _run_case(k1, B=2, N=8, C=32, H=4)
    # 2) lane-dense path: head_dim = 128.
    _run_case(k2, B=2, N=16, C=256, H=2)
    # 3) lane-dense path with N not a multiple of the tile -> padding + key masking.
    _run_case(k3, B=2, N=12, C=256, H=2)
    print("KERNEL_OK")
</pallas_src>

<mosaic_0001>
module attributes {stable_mosaic.version = 11 : i64} {
  func.func @_qkv_proj_head_kernel(%arg0: i32, %arg1: i32, %arg2: i32, %arg3: i32, %arg4: memref<1x8x32xbf16, #tpu.memory_space<vmem>>, %arg5: memref<1x1x8x32xbf16, #tpu.memory_space<vmem>>, %arg6: memref<1x1x1x8x8xbf16, #tpu.memory_space<vmem>>) attributes {dimension_semantics = [#tpu.dimension_semantics<parallel>, #tpu.dimension_semantics<parallel>, #tpu.dimension_semantics<arbitrary>, #tpu.dimension_semantics<arbitrary>], iteration_bounds = array<i64: 2, 1, 3, 4>, scalar_prefetch = 0 : i64, scratch_operands = 0 : i64, tpu.core_type = #tpu.core_type<tc>, window_params = [{transform_indices = @transform_0, window_bounds = array<i64: 1, 8, 32>}, {transform_indices = @transform_1, window_bounds = array<i64: 1, 1, 8, 32>}, {transform_indices = @transform_2, window_bounds = array<i64: 1, 1, 1, 8, 8>}]} {
    %c0 = arith.constant 0 : index
    %c0_0 = arith.constant 0 : index
    %c0_1 = arith.constant 0 : index
    %0 = vector.load %arg4[%c0, %c0_0, %c0_1] : memref<1x8x32xbf16, #tpu.memory_space<vmem>>, vector<1x8x32xbf16>
    %1 = vector.shape_cast %0 : vector<1x8x32xbf16> to vector<8x32xbf16>
    %c0_2 = arith.constant 0 : index
    %c0_3 = arith.constant 0 : index
    %c0_4 = arith.constant 0 : index
    %c0_5 = arith.constant 0 : index
    %2 = vector.load %arg5[%c0_2, %c0_3, %c0_4, %c0_5] : memref<1x1x8x32xbf16, #tpu.memory_space<vmem>>, vector<1x1x8x32xbf16>
    %3 = vector.shape_cast %2 : vector<1x1x8x32xbf16> to vector<8x32xbf16>
    %cst = arith.constant dense<0.000000e+00> : vector<8x8xf32>
    %4 = tpu.matmul %1, %3, %cst {dimension_numbers = #tpu.dot_dimension_numbers<[1], [1], [0], [0], [0, 0, 1, 0], [], []>} : vector<8x32xbf16>, vector<8x32xbf16>, vector<8x8xf32> -> vector<8x8xf32>
    %5 = arith.truncf %4 : vector<8x8xf32> to vector<8x8xbf16>
    %c0_6 = arith.constant 0 : index
    %c0_7 = arith.constant 0 : index
    %c0_8 = arith.constant 0 : index
    %c0_9 = arith.constant 0 : index
    %c0_10 = arith.constant 0 : index
    %6 = vector.load %arg6[%c0_6, %c0_7, %c0_8, %c0_9, %c0_10] : memref<1x1x1x8x8xbf16, #tpu.memory_space<vmem>>, vector<1x1x1x8x8xbf16>
    %7 = vector.shape_cast %6 : vector<1x1x1x8x8xbf16> to vector<8x8xbf16>
    %8 = vector.shape_cast %5 : vector<8x8xbf16> to vector<1x1x1x8x8xbf16>
    tpu.vector_store %arg6[%c0_6, %c0_7, %c0_8, %c0_9, %c0_10], %8 {strides = array<i32>} : memref<1x1x1x8x8xbf16, #tpu.memory_space<vmem>>, vector<1x1x1x8x8xbf16>,
    return
  }
  func.func @transform_0(%arg0: i32, %arg1: i32, %arg2: i32, %arg3: i32) -> (i32, i32, i32) {
    %c0_i32 = arith.constant 0 : i32
    %c0_i32_0 = arith.constant 0 : i32
    return %arg0, %arg1, %c0_i32 : i32, i32, i32
  }
  func.func @transform_1(%arg0: i32, %arg1: i32, %arg2: i32, %arg3: i32) -> (i32, i32, i32, i32) {
    %c0_i32 = arith.constant 0 : i32
    %c0_i32_0 = arith.constant 0 : i32
    %c0_i32_1 = arith.constant 0 : i32
    return %arg2, %arg3, %c0_i32, %c0_i32_0 : i32, i32, i32, i32
  }
  func.func @transform_2(%arg0: i32, %arg1: i32, %arg2: i32, %arg3: i32) -> (i32, i32, i32, i32, i32) {
    %c0_i32 = arith.constant 0 : i32
    %c0_i32_0 = arith.constant 0 : i32
    return %arg2, %arg0, %arg3, %arg1, %c0_i32 : i32, i32, i32, i32, i32
  }
}

</mosaic_0001>

<bundles_post_ra>
// kernel: tpu_custom_call.1
= control target key start
LH: loop header
LB: loop body
LE: loop exit
PB: predicated region body
PF: predicated region fallthrough
CT: control target
= control target key end

     0   :  { %s1091_s0 = inlined_call_operand.hbm [shape: bf16[2,8,32], index: 0, kind: input, shape index: {}]   ;;  %s1092_s1 = inlined_call_operand.hbm [shape: bf16[3,4,8,32], index: 1, kind: input, shape index: {}]   ;;  %s1093_s2 = inlined_call_operand.hbm [shape: bf16[3,2,4,8,8], index: 2, kind: output, shape index: {}]  }
   0x1   :  { %1104 = sst [smem:[#allocation22_spill]] %s1091_s0 }
   0x2   :  { %1105 = sst [smem:[#allocation23_spill]] %s1092_s1 }
   0x3   :  { %1106 = sst [smem:[#allocation24_spill]] %s1093_s2 }
   0x4   :  { %7 = vsyncpa [#allocation3], 0 }
   0x5   :  { %9 = vsyncpa [#allocation3 + $0x1], 0 }
   0x6   :  { %10 = vsyncpa [#allocation6], 0 }
   0x7   :  { %12 = vsyncpa [#allocation6 + $0x1], 0 }
   0x8   :  { %13 = vsyncpa [#allocation4], 0 }
   0x9   :  { %15 = vsyncpa [#allocation4 + $0x1], 0  ;;  %s817_s9 = smov 0   ;;  %s819_s10 = smov 0  }
   0xa   :  { %s821_s11 = smov 0   ;;  %s823_s12 = smov 0  }
   0xb   :  { %s825_s13 = smov 0   ;;  %s827_s14 = smov 0  }
   0xc   :  { %s829_s15 = smov 0   ;;  %s831_s16 = smov 0  }
   0xd   :  { %s833_s17 = smov 0   ;;  %s835_s18 = smov 0  }
   0xe   :  { %s837_s19 = smov 0   ;;  %s839_s20 = smov 0  }
   0xf   :  { %s841_s21 = smov 0   ;;  %s843_s22 = smov 0  }
  0x10   :  { %s845_s23 = smov 0   ;;  %s847_s24 = smov 0  }
  0x11 LB: > { %1107 = sst [smem:[#allocation11_spill]] %s740_s9  ;;  %s407_s25 = sadd.s32 4294967295, %s800_s24   ;;  %s800_s24 = sphi %s847_s24, %s21_s24   ;;  %s796_s23 = sphi %s845_s23, %s1142_s23   ;;  %s792_s22 = sphi %s843_s22, %s1141_s22   ;;  %s788_s21 = sphi %s841_s21, %s1152_s21   ;;  %s784_s20 = sphi %s839_s20, %s1139_s20   ;;  %s780_s19 = sphi %s837_s19, %s1138_s19   ;;  %s776_s18 = sphi %s835_s18, %s1151_s18   ;;  %s772_s17 = sphi %s833_s17, %s1150_s17   ;;  %s768_s16 = sphi %s831_s16, %s1149_s16   ;;  %s764_s15 = sphi %s829_s15, %s1148_s15   ;;  %s760_s14 = sphi %s827_s14, %s1147_s14   ;;  %s756_s13 = sphi %s825_s13, %s1146_s13   ;;  %s752_s12 = sphi %s823_s12, %s1145_s12   ;;  %s748_s11 = sphi %s821_s11, %s1144_s11   ;;  %s744_s10 = sphi %s819_s10, %s1143_s10   ;;  %s740_s9 = sphi %s817_s9, %s1136_s9  }
  0x12   : > { %1108 = sst [smem:[#allocation12_spill]] %s744_s10  ;;  %s47_s26 = sadd.s32 1, %s796_s23 }
  0x13   : > { %1109 = sst [smem:[#allocation13_spill]] %s776_s18  ;;  %p63_p0 = scmp.ne.s32.totalorder %s772_s17, %s768_s16 }
  0x14   : > { %1110 = sst [smem:[#allocation14_spill]] %s780_s19  ;;  %p64_p1 = scmp.eq.s32.totalorder %s800_s24, 0 }
  0x15   : > { %1111 = sst [smem:[#allocation15_spill]] %s792_s22  ;;  %p69_p2 = scmp.ne.s32.totalorder %s768_s16, %s764_s15 }
  0x16   : > { %1112 = sst [smem:[#allocation16_spill]] %s796_s23  ;;  %p902_p3 = scmp.eq.s32.totalorder %s407_s25, 0 }
  0x17   : > { %p906_p4 = scmp.eq.s32.totalorder %s407_s25, 23  ;;  %p65_p5 = por %p64_p1, %p63_p0 }
  0x18   : > { %p914_p6 = por %p902_p3, %p69_p2  ;;  %p444_p7 = scmp.lt.s32.totalorder %s800_s24, 24 }
  0x19   : > { %s153_s3 = sand.u32 1, %s772_s17   ;;  %s412_s4 = sshll.u32 %s796_s23, 2 }
  0x1a   : > { %s411_s5 = sshll.u32 %s153_s3, 2  ;;  %s1116_s0 = sld [smem:[#allocation22_spill]] }
  0x1b   : > { %s157_s25 = scalar_lea.vmem [#allocation2], %s411_s5  ;;  %p434_p8 = pnand %p444_p7, %p65_p5 }
  0x1c   : > { %s166_s27 = sshll.u32 %s157_s25, 4  ;;  %p416_p9 = scmp.ge.s32.totalorder %s800_s24, 1  ;;  %s167_s27 = int_to_ptr.vmem [resolvable:$true] %s166_s27 }
  0x1d   : > { %p192_p10 = scmp.lt.s32.totalorder %s800_s24, 25  ;;  %s154_s6 = scalar_lea.sflag [#allocation3], %s153_s3 }
  0x1e   : > { %s408_s5 = sadd.s32 4294967294, %s800_s24   ;;  %s36_s7 = sadd.s32 1, %s788_s21 }
  0x1f   : > { %p928_p11 = pnand %p416_p9, %p192_p10  ;;  %p37_p12 = scmp.ge.s32.totalorder %s36_s7, 4 }
  0x20   : > { %s162_s8 = scalar_lea.hbm %s1116_s0, %s412_s4  ;;  %s84_s25 = sadd.s32 1, %s760_s14 }
  0x21   : > { %s164_s15 = sshll.u32 %s162_s8, 4  ;;  %s39_s8 = sadd.s32 1, %s792_s22  ;;  %s165_s15 = int_to_ptr.hbm [resolvable:$true] %s164_s15 }
  0x22   : > { %436 = dma.hbm_to_vmem [thread:$0]  (!%p434_p8), %s165_s15, 64, %s167_s27, %s154_s6  }
  0x23   : > { %p91_p13 = scmp.ne.s32.totalorder %s760_s14, %s756_s13  ;;  %p97_p0 = scmp.ne.s32.totalorder %s756_s13, %s752_s12 }
  0x24   : > { %s1154_s7 = smov (%p37_p12, %s36_s7), 0  ;;  %s1156_s8 = smov (!%p37_p12, %s39_s8), %s792_s22 }
  0x25   : > { %1118 = sst [smem:[#allocation17_spill]] %s1154_s7  ;;  %s80_s27 = ssub.s32 %s788_s21, %s1154_s7 }
  0x26   : > { %p947_p2 = por %p91_p13, %p64_p1  ;;  %p41_p5 = scmp.ge.s32.totalorder %s1156_s8, 3 }
  0x27   : > { %p953_p8 = por %p97_p0, %p902_p3  ;;  %s116_s12 = sadd.s32 1, %s748_s11 }
  0x28   : > { %p126_p9 = scmp.ne.s32.totalorder %s748_s11, %s744_s10  ;;  %s1158_s8 = smov (%p41_p5, %s1156_s8), 0 }
  0x29   : > { %1121 = sst [smem:[#allocation18_spill]] %s1158_s8  ;;  %s1160_s26 = smov (!%p41_p5, %s47_s26), %s796_s23 }
  0x2a   : > { %s79_s6 = ssub.s32 %s792_s22, %s1158_s8  ;;  %p969_p1 = por %p906_p4, %p126_p9 }
  0x2b   : > { %p49_p3 = scmp.ge.s32.totalorder %s1160_s26, 2  ;;  %s81_s28 = sor.u32 %s80_s27, %s79_s6 }
  0x2c   : > { %s1122_s0 = scalar_select %p969_p1, 1, 0 }
  0x2d   : > { %p82_p10 = scmp.eq.s32.totalorder %s81_s28, 0  ;;  %p132_p12 = scmp.ne.s32.totalorder %s744_s10, %s740_s9 }
  0x2e   : > { %1123 = sst [smem:[#allocation19_spill]] %s1122_s0  ;;  %s1162_s26 = smov (%p49_p3, %s1160_s26), 0 }
  0x2f   : > { %1124 = sst [smem:[#allocation20_spill]] %s1162_s26  ;;  %s51_s2 = ssub.s32 %s796_s23, %s1162_s26 }
  0x30   : > { %s978_s7 = scalar_select %p82_p10, %s760_s14, %s84_s25  }
  0x31   : > { %p133_p13 = scmp.eq.s32.totalorder %s408_s5, 23  ;;  %p54_p0 = scmp.eq.s32.totalorder %s51_s2, 0 }
  0x32   : > { %1125 = sst [smem:[#allocation21_spill]] %s978_s7  ;;  %s109_s29 = sor.u32 %s79_s6, %s51_s2 }
  0x33   : > { %s111_s8 = sor.u32 %s109_s29, %s80_s27  ;;  %p982_p4 = por %p133_p13, %p132_p12 }
  0x34   : > { %s1127_s19 = sadd.s32 1, %s772_s17  ;;  %p114_p5 = scmp.eq.s32.totalorder %s111_s8, 0 }
  0x35   : > { %s989_s28 = scalar_select %p54_p0, %s772_s17, %s1127_s19  }
  0x36   : > { %s173_s9 = sand.u32 1, %s760_s14   ;;  %s414_s25 = sshll.u32 %s792_s22, 2 }
  0x37   : > { %s413_s10 = sshll.u32 %s173_s9, 2  ;;  %s181_s26 = sadd.s32 %s788_s21, %s414_s25 }
  0x38   : > { %s993_s18 = scalar_select %p114_p5, %s748_s11, %s116_s12  }
  0x39   : > { %s177_s5 = scalar_lea.vmem [#allocation5], %s413_s10  ;;  %s415_s7 = sshll.u32 %s181_s26, 2 }
  0x3a   : > { %s187_s23 = sshll.u32 %s177_s5, 4  ;;  %s1128_s1 = sld [smem:[#allocation23_spill]]  ;;  %s188_s23 = int_to_ptr.vmem [resolvable:$true] %s187_s23 }
  0x3b   : > { %p437_p9 = pnand %p444_p7, %p947_p2  ;;  %s174_s8 = scalar_lea.sflag [#allocation6], %s173_s9 }
  0x3c   : > { %s198_s10 = sand.u32 (!%p928_p11), 1, %s768_s16  }
  0x3d   : > { %s417_s12 = sshll.u32 (!%p928_p11), %s198_s10, 2  ;;  %s199_s26 = scalar_lea.sflag (!%p928_p11), [#allocation3], %s198_s10 }
  0x3e   : > { %196 = sbr.rel (%p928_p11) target bundleno = 215 (0xd7), region = 28  ;;  %s202_s29 = scalar_lea.vmem (!%p928_p11), [#allocation2], %s417_s12 }
  0x40   : > { %s183_s6 = scalar_lea.hbm %s1128_s1, %s415_s7 }
  0x41   : > { %s185_s19 = sshll.u32 %s183_s6, 4  ;;  %s186_s19 = int_to_ptr.hbm [resolvable:$true] %s185_s19 }
  0x42   : > { %439 = dma.hbm_to_vmem [thread:$0]  (!%p437_p9), %s186_s19, 64, %s188_s23, %s174_s8  }
  0x43   : > { %727 = dma.done.wait (%p914_p6), %s199_s26, 64  }
  0x44   : > { %729 = vsyncadd (%p914_p6), %s199_s26, 4294967232  ;;  %s208_s7 = sand.u32 1, %s756_s13  }
  0x45   : > { %s418_s3 = sshll.u32 %s208_s7, 2  ;;  %s209_s9 = scalar_lea.sflag [#allocation6], %s208_s7 }
  0x46   : > { %s212_s23 = scalar_lea.vmem [#allocation5], %s418_s3 }
  0x47   : > { %731 = dma.done.wait (%p953_p8), %s209_s9, 64  }
  0x48   : > { %733 = vsyncadd (%p953_p8), %s209_s9, 4294967232  ;;  %s1129_s4 = sld [smem:[#allocation13_spill]]  ;;  %vm242_vm0 = vcmask 261120   ;;  %v241_v0 = vld [vmem:[%s212_s23] sm:$0xf]  ;;  %s422_s30 = sshll.u32 %s784_s20, 2 }
  0x49   : > { %s1130_s25 = sld [smem:[#allocation14_spill]]  ;;  %v247_v1 = vsel %vm242_vm0, %v241_v0, 0  ;;  %v240_v2 = vld [vmem:[%s202_s29] sm:$0xf]  ;;  %vm263_vm1 = vcmask 60416  }
  0x4a   : > { %s1131_s5 = sld [smem:[#allocation12_spill]]  ;;  %256 = vmatpush.bf16.xpose.msra.mxu0 %v247_v1 }
  0x4b   : > { %s1132_s26 = sld [smem:[#allocation24_spill]] }
  0x4e   : > { %s277_s2 = sadd.s32 %s1129_s4, %s422_s30 }
  0x4f   : > { %s423_s27 = sshll.u32 %s1130_s25, 3 }
  0x50   : > { %s279_s6 = sadd.s32 %s423_s27, %s277_s2  ;;  %s236_s19 = sand.u32 1, %s1131_s5  }
  0x51   : > { %420 = vmatmul.msk.bf16.vlgmr.msra.gmra.mxu0 %vm242_vm0, %v240_v2  ;;  %s424_s8 = sshll.u32 %s279_s6, 2  ;;  %s419_s10 = sshll.u32 %s236_s19, 2 }
  0x52   : > { %s281_s3 = scalar_lea.hbm %s1132_s26, %s424_s8  ;;  %s238_s9 = scalar_lea.vmem [#allocation7], %s419_s10 }
  0x53   : > { %s283_s1 = sshll.u32 %s238_s9, 4  ;;  %s285_s22 = sshll.u32 %s281_s3, 4  ;;  %s284_s1 = int_to_ptr.vmem [resolvable:$true] %s283_s1  ;;  %s286_s22 = int_to_ptr.hbm [resolvable:$true] %s285_s22 }
  0x54   : > { %s266_s20 = scalar_lea.sflag [#allocation4], %s236_s19  ;;  %s648_s29 = sshra.s32 %s286_s22, 4  ;;  %s649_s29 = int_to_ptr.hbm [resolvable:$true] %s648_s29 }
  0x55   : > { %s650_s23 = scalar_lea.hbm %s649_s29, 4  ;;  %s654_s5 = scalar_lea.hbm %s1132_s26, 96 }
  0x56   : > { %p651_p6 = scmp.ne.s32.totalorder %s649_s29, %s650_s23  ;;  %p655_p2 = scmp.lt.s32.totalorder %s649_s29, %s1132_s26 }
  0x57   : > { %p656_p8 = scmp.lt.s32.totalorder %s654_s5, %s650_s23 }
  0x58   : > { %p652_p7 = pnand %p651_p6, %p969_p1 }
  0x59   : > { %p657_p3 = por %p656_p8, %p655_p2 }
  0x5a   : > { %p653_p11 = pneg %p652_p7 }
  0x5c   : > { %p658_p10 = pnand %p657_p3, %p653_p11 }
  0xce   : > { %v258_v3 = vpop.f32.mrf.mxu0 }
  0xcf   : > { %v262_v4 = vpack.c.bf16 %v258_v3, %v258_v3 }
  0xd1   : > { %264 = vst.msk [vmem:[%s238_s9] sm:$0xf] %vm263_vm1, %v262_v4 }
  0xd2   : > { %661 = shalt.err (!%p658_p10)
}
  0xd3   : > { %431 = dma.vmem_to_hbm [thread:$0]  (%p969_p1), %s284_s1, 64, %s286_s22, %s266_s20  }
  0xd6   : > { %v260_v5 = vpop.f32.mrf.mxu0 }
  0xd7 PF: > { %s1134_s27 = sld [smem:[#allocation11_spill]]  ;;  %p445_p12 = scmp.ge.s32.totalorder %s800_s24, 2 }
  0xd9   : > { %p441_p13 = pnand %p445_p12, %p982_p4 }
  0xdb   : > { %p442_p0 = pneg %p441_p13 }
  0xdd   : > { %s297_s6 = sand.u32 1, %s1134_s27  }
  0xde   : > { %s298_s19 = scalar_lea.sflag [#allocation4], %s297_s6 }
  0xdf   : > { %735 = dma.done.wait (%p442_p0), %s298_s19, 64  }
  0xe0   : > { %737 = vsyncadd (%p442_p0), %s298_s19, 4294967232  ;;  %s21_s24 = sadd.s32 1, %s800_s24   ;;  %s1136_s9 = sld [smem:[#allocation12_spill]] }
  0xe1   : > { %p1038_p5 = scmp.ge.s32.totalorder %s21_s24, 26   ;;  %s1137_s1 = sld [smem:[#allocation21_spill]] }
  0xe2   : > { %s1138_s19 = sld [smem:[#allocation15_spill]]  ;;  %s1143_s10 = smov %s748_s11 }
  0xe3   : > { %s1139_s20 = sld [smem:[#allocation16_spill]]  ;;  %s1144_s11 = smov %s993_s18 }
  0xe4   : > { %s1140_s0 = sld [smem:[#allocation17_spill]]  ;;  %s1145_s12 = smov %s756_s13 }
  0xe5   : > { %s1141_s22 = sld [smem:[#allocation18_spill]]  ;;  %s1146_s13 = smov %s760_s14 }
  0xe6   : > { %s1142_s23 = sld [smem:[#allocation20_spill]]  ;;  %s1148_s15 = smov %s768_s16 }
  0xe7   : > { %s1147_s14 = smov %s1137_s1  ;;  %s1149_s16 = smov %s772_s17 }
  0xe8   : > { %s1150_s17 = smov %s989_s28  ;;  %s1151_s18 = smov %s788_s21 }
  0xe9   :  { %20 = sbr.rel (!%p1038_p5) target bundleno = 17 (0x11), region = 86 }
  0xea   : > { %s1152_s21 = smov %s1140_s0 }
  0xee   :  { %304 = vsyncpa [#allocation3], 1 }
  0xef   :  { %306 = vsyncpa [#allocation3 + $0x1], 1 }
  0xf0   :  { %307 = vsyncpa [#allocation6], 1 }
  0xf1   :  { %309 = vsyncpa [#allocation6 + $0x1], 1 }
  0xf2   :  { %310 = vsyncpa [#allocation4], 1 }
  0xf3   :  { %312 = vsyncpa [#allocation4 + $0x1], 1 }

</bundles_post_ra>
